<compile_context>
chip_gen: v6e
topology: v6e:2x2x1
jax: 0.10.0
libtpu: 0.0.40
codegen_flags: <defaults>
</compile_context>

<pallas_src>
import functools

import numpy as np
import jax
import jax.numpy as jnp
from jax import lax
from jax.experimental import pallas as pl
from jax.experimental.pallas import tpu as pltpu


def mqattention_kernel(u_ref, m_ref, c_ref, mask_ref, wT_ref, b_ref,
                       out_ref, acc_ref, *, scale):
    ni = pl.program_id(1)

    @pl.when(ni == 0)
    def _():
        acc_ref[...] = jnp.zeros_like(acc_ref)

    u_f32 = u_ref[...]                         # (Bblk, Tq, d)  f32 (residual)
    u_bf = u_f32.astype(jnp.bfloat16)          # bf16 operand for the MXU
    m_bf = m_ref[...]                          # (Bblk, tn, d)  bf16
    c_bf = c_ref[...]                          # (Bblk, tn, d)  bf16
    mask = mask_ref[...]                       # (Bblk, 1,  tn) f32 {0,1}

    # scores = (u @ m^T) / sqrt(d) -- bf16 MXU matmul, f32 accumulation.
    # (Mosaic handles the transposed-RHS contraction natively; no XLU transpose.)
    scores = jnp.einsum("bqd,bnd->bqn", u_bf, m_bf,
                        preferred_element_type=jnp.float32) * jnp.float32(scale)

    # masked_fill(memory_mask == 0, -1e9): must SET (not add) so that the
    # query-axis softmax gives uniform 1/Tq on masked columns, exactly as torch.
    scores = jnp.where(mask == 0.0, jnp.float32(-1e9), scores)

    # Numerically-stable softmax over the QUERY axis (dim=-2 in torch).
    # Each N column is independent, so per-N-tile softmax is exact.
    s_max = jnp.max(scores, axis=1, keepdims=True)          # (Bblk, 1, tn)
    e = jnp.exp(scores - s_max)
    denom = jnp.sum(e, axis=1, keepdims=True)
    p = e * pl.reciprocal(denom, approx=True)                # EUP, not VPU

    # o accumulation across N tiles (f32 accumulator in VMEM).
    acc_ref[...] += jnp.einsum("bqn,bnd->bqd", p.astype(jnp.bfloat16), c_bf,
                               preferred_element_type=jnp.float32)

    @pl.when(ni == pl.num_programs(1) - 1)
    def _():
        # Residual add in f32, then one big lane-dense linear head:
        # (Bblk*Tq, d) @ (d, d_pad) + bias.
        x = acc_ref[...] + u_f32                             # (Bblk, Tq, d) f32
        bblk, tq, dd = x.shape
        x2 = x.reshape(bblk * tq, dd).astype(jnp.bfloat16)
        y = jnp.dot(x2, wT_ref[...], preferred_element_type=jnp.float32) + b_ref[...]
        out_ref[...] = y.reshape(out_ref.shape).astype(out_ref.dtype)


def mq_attention_forward(u, m, c, memory_mask, W, b, *, bblk=None, tn=None):
    """u: (B, Tq, d), m/c: (B, N, d), memory_mask: (B, N), W: (d, d), b: (d,)."""
    B, Tq, d = u.shape
    _, N, _ = m.shape
    scale = float(1.0 / np.sqrt(d))

    # Lane-dense linear head: pad output width up to a multiple of 128.
    d_pad = ((d + 127) // 128) * 128

    # Simple divisor-based tile choices (small shapes -> single step each).
    if bblk is None:
        bblk = B if B <= 8 else (8 if B % 8 == 0 else B)
    if tn is None:
        tn = N if N <= 512 else (512 if N % 512 == 0 else N)

    # Wrapper-side layout / dtype prep.
    u_f32 = jnp.asarray(u, jnp.float32)
    m_bf = jnp.asarray(m).astype(jnp.bfloat16)               # halve m/c DMA bytes
    c_bf = jnp.asarray(c).astype(jnp.bfloat16)
    mask3 = jnp.asarray(memory_mask).astype(jnp.float32).reshape(B, 1, N)

    wT = jnp.asarray(W, jnp.float32).T.astype(jnp.bfloat16)  # torch Linear: x @ W^T
    b_f32 = jnp.asarray(b, jnp.float32)
    if d_pad != d:
        wT = jnp.pad(wT, ((0, 0), (0, d_pad - d)))
        b_f32 = jnp.pad(b_f32, (0, d_pad - d))
    b2 = b_f32.reshape(1, d_pad)

    kernel = functools.partial(mqattention_kernel, scale=scale)

    out = pl.pallas_call(
        kernel,
        out_shape=jax.ShapeDtypeStruct((B, Tq, d_pad), jnp.float32),
        grid_spec=pltpu.PrefetchScalarGridSpec(
            num_scalar_prefetch=0,
            grid=(B // bblk, N // tn),                        # (batch blocks, N tiles)
            in_specs=[
                pl.BlockSpec((bblk, Tq, d), lambda bi, ni: (bi, 0, 0)),   # u (f32)
                pl.BlockSpec((bblk, tn, d), lambda bi, ni: (bi, ni, 0)),  # m (bf16)
                pl.BlockSpec((bblk, tn, d), lambda bi, ni: (bi, ni, 0)),  # c (bf16)
                pl.BlockSpec((bblk, 1, tn), lambda bi, ni: (bi, 0, ni)),  # mask (f32)
                pl.BlockSpec((d, d_pad), lambda bi, ni: (0, 0)),          # W^T resident
                pl.BlockSpec((1, d_pad), lambda bi, ni: (0, 0)),          # bias resident
            ],
            out_specs=pl.BlockSpec((bblk, Tq, d_pad), lambda bi, ni: (bi, 0, 0)),
            scratch_shapes=[pltpu.VMEM((bblk, Tq, d), jnp.float32)],      # o accumulator
        ),
        compiler_params=pltpu.CompilerParams(
            dimension_semantics=("parallel", "arbitrary"),
            vmem_limit_bytes=32 * 1024 * 1024,                # safe on v5e/v6e/v7x
        ),
    )(u_f32, m_bf, c_bf, mask3, wT, b2)

    return out[..., :d] if d_pad != d else out


if __name__ == "__main__":
    # small, deterministic problem consistent with the module
    B, Tq, N, d = 2, 8, 16, 32   # batch, queries, memories, hidden dim

    key = jax.random.PRNGKey(0)
    ku, km, kc, kmask, kw, kb = jax.random.split(key, 6)

    u = jax.random.normal(ku, (B, Tq, d), dtype=jnp.float32)
    m = jax.random.normal(km, (B, N, d), dtype=jnp.float32)
    c = jax.random.normal(kc, (B, N, d), dtype=jnp.float32)
    memory_mask = jax.random.bernoulli(kmask, 0.8, (B, N)).astype(jnp.int32)
    W = jax.random.normal(kw, (d, d), dtype=jnp.float32) * (1.0 / np.sqrt(d))
    b = jax.random.normal(kb, (d,), dtype=jnp.float32) * 0.1

    out = mq_attention_forward(u, m, c, memory_mask, W, b)
    jax.block_until_ready(out)

    # plain-JAX f32 reference (same math as the torch module)
    scale = 1.0 / np.sqrt(d)
    scores = jnp.einsum("bqd,bnd->bqn", u, m, precision=lax.Precision.HIGHEST) * scale
    scores = jnp.where(memory_mask[:, None, :] == 0, jnp.float32(-1e9), scores)
    p = jax.nn.softmax(scores, axis=-2)
    o = jnp.einsum("bqn,bnd->bqd", p, c, precision=lax.Precision.HIGHEST)
    out_ref = (
        jnp.einsum("bqd,de->bqe", o + u, W.T, precision=lax.Precision.HIGHEST) + b
    )

    assert out.shape == (B, Tq, d)
    # bf16 MXU operands + approx reciprocal -> slightly looser tolerance vs f32 ref
    assert jnp.allclose(out, out_ref, atol=3e-2, rtol=3e-2), "output mismatch"

    print("KERNEL_OK")
</pallas_src>

<mosaic_0001>
module attributes {stable_mosaic.version = 11 : i64} {
  func.func @mqattention_kernel(%arg0: i32, %arg1: i32, %arg2: memref<2x8x32xf32, #tpu.memory_space<vmem>>, %arg3: memref<2x16x32xbf16, #tpu.memory_space<vmem>>, %arg4: memref<2x16x32xbf16, #tpu.memory_space<vmem>>, %arg5: memref<2x1x16xf32, #tpu.memory_space<vmem>>, %arg6: memref<32x128xbf16, #tpu.memory_space<vmem>>, %arg7: memref<1x128xf32, #tpu.memory_space<vmem>>, %arg8: memref<2x8x128xf32, #tpu.memory_space<vmem>>, %arg9: memref<2x8x32xf32, #tpu.memory_space<vmem>>) attributes {dimension_semantics = [#tpu.dimension_semantics<parallel>, #tpu.dimension_semantics<arbitrary>], iteration_bounds = array<i64: 1, 1>, scalar_prefetch = 0 : i64, scratch_operands = 1 : i64, tpu.core_type = #tpu.core_type<tc>, window_params = [{transform_indices = @transform_0, window_bounds = array<i64: 2, 8, 32>}, {transform_indices = @transform_1, window_bounds = array<i64: 2, 16, 32>}, {transform_indices = @transform_2, window_bounds = array<i64: 2, 16, 32>}, {transform_indices = @transform_3, window_bounds = array<i64: 2, 1, 16>}, {pipeline_mode = #tpu.pipeline_mode<synchronous>, transform_indices = @transform_4, window_bounds = array<i64: 32, 128>}, {pipeline_mode = #tpu.pipeline_mode<synchronous>, transform_indices = @transform_5, window_bounds = array<i64: 1, 128>}, {transform_indices = @transform_6, window_bounds = array<i64: 2, 8, 128>}]} {
    %c0_i32 = arith.constant 0 : i32
    %0 = arith.cmpi eq, %arg1, %c0_i32 : i32
    %1 = arith.extui %0 : i1 to i32
    %c0_i32_0 = arith.constant 0 : i32
    %2 = arith.cmpi ne, %1, %c0_i32_0 : i32
    scf.if %2 {
      %cst_26 = arith.constant 0.000000e+00 : f32
      %35 = vector.broadcast %cst_26 : f32 to vector<2x8x32xf32>
      %c0_27 = arith.constant 0 : index
      %c0_28 = arith.constant 0 : index
      %c0_29 = arith.constant 0 : index
      %36 = vector.load %arg9[%c0_27, %c0_28, %c0_29] : memref<2x8x32xf32, #tpu.memory_space<vmem>>, vector<2x8x32xf32>
      tpu.vector_store %arg9[%c0_27, %c0_28, %c0_29], %35 {strides = array<i32>} : memref<2x8x32xf32, #tpu.memory_space<vmem>>, vector<2x8x32xf32>,
    } else {
    }
    %c0 = arith.constant 0 : index
    %c0_1 = arith.constant 0 : index
    %c0_2 = arith.constant 0 : index
    %3 = vector.load %arg2[%c0, %c0_1, %c0_2] : memref<2x8x32xf32, #tpu.memory_space<vmem>>, vector<2x8x32xf32>
    %4 = arith.truncf %3 : vector<2x8x32xf32> to vector<2x8x32xbf16>
    %c0_3 = arith.constant 0 : index
    %c0_4 = arith.constant 0 : index
    %c0_5 = arith.constant 0 : index
    %5 = vector.load %arg3[%c0_3, %c0_4, %c0_5] : memref<2x16x32xbf16, #tpu.memory_space<vmem>>, vector<2x16x32xbf16>
    %c0_6 = arith.constant 0 : index
    %c0_7 = arith.constant 0 : index
    %c0_8 = arith.constant 0 : index
    %6 = vector.load %arg4[%c0_6, %c0_7, %c0_8] : memref<2x16x32xbf16, #tpu.memory_space<vmem>>, vector<2x16x32xbf16>
    %c0_9 = arith.constant 0 : index
    %c0_10 = arith.constant 0 : index
    %c0_11 = arith.constant 0 : index
    %7 = vector.load %arg5[%c0_9, %c0_10, %c0_11] : memref<2x1x16xf32, #tpu.memory_space<vmem>>, vector<2x1x16xf32>
    "tpu.trace_start"() <{level = 10 : i32, message = "bqd,bnd->bqn"}> : () -> ()
    %cst = arith.constant dense<0.000000e+00> : vector<2x8x16xf32>
    %8 = tpu.matmul %4, %5, %cst {dimension_numbers = #tpu.dot_dimension_numbers<[2], [2], [1], [1], [0, 0, 0, 1, 1, 1], [0], [0]>} : vector<2x8x32xbf16>, vector<2x16x32xbf16>, vector<2x8x16xf32> -> vector<2x8x16xf32>
    "tpu.trace_stop"() : () -> ()
    %cst_12 = arith.constant 0.176776692 : f32
    %9 = vector.broadcast %cst_12 : f32 to vector<2x8x16xf32>
    %10 = arith.mulf %8, %9 : vector<2x8x16xf32>
    %cst_13 = arith.constant 0.000000e+00 : f32
    %11 = vector.broadcast %cst_13 : f32 to vector<2x1x16xf32>
    %12 = arith.cmpf oeq, %7, %11 : vector<2x1x16xf32>
    %cst_14 = arith.constant -1.000000e+09 : f32
    %13 = vector.shape_cast %12 : vector<2x1x16xi1> to vector<2x1x16xi1>
    %14 = vector.broadcast %13 : vector<2x1x16xi1> to vector<2x8x16xi1>
    %15 = vector.broadcast %cst_14 : f32 to vector<2x8x16xf32>
    %16 = arith.select %14, %15, %10 : vector<2x8x16xi1>, vector<2x8x16xf32>
    %cst_15 = arith.constant dense<0xFF800000> : vector<2x16xf32>
    %17 = vector.multi_reduction <maximumf>, %16, %cst_15 [1] : vector<2x8x16xf32> to vector<2x16xf32>
    %18 = vector.shape_cast %17 : vector<2x16xf32> to vector<2x1x16xf32>
    %19 = vector.broadcast %18 : vector<2x1x16xf32> to vector<2x8x16xf32>
    %20 = arith.subf %16, %19 : vector<2x8x16xf32>
    %21 = math.exp %20 : vector<2x8x16xf32>
    %cst_16 = arith.constant dense<0.000000e+00> : vector<2x16xf32>
    %22 = vector.multi_reduction <add>, %21, %cst_16 [1] : vector<2x8x16xf32> to vector<2x16xf32>
    %23 = vector.shape_cast %22 : vector<2x16xf32> to vector<2x1x16xf32>
    %24 = tpu.reciprocal %23 {approx = true} : vector<2x1x16xf32> -> vector<2x1x16xf32>
    %25 = vector.broadcast %24 : vector<2x1x16xf32> to vector<2x8x16xf32>
    %26 = arith.mulf %21, %25 : vector<2x8x16xf32>
    %c0_17 = arith.constant 0 : index
    %c0_18 = arith.constant 0 : index
    %c0_19 = arith.constant 0 : index
    %27 = vector.load %arg9[%c0_17, %c0_18, %c0_19] : memref<2x8x32xf32, #tpu.memory_space<vmem>>, vector<2x8x32xf32>
    %28 = arith.truncf %26 : vector<2x8x16xf32> to vector<2x8x16xbf16>
    "tpu.trace_start"() <{level = 10 : i32, message = "bqn,bnd->bqd"}> : () -> ()
    %cst_20 = arith.constant dense<0.000000e+00> : vector<2x8x32xf32>
    %29 = tpu.matmul %28, %6, %cst_20 {dimension_numbers = #tpu.dot_dimension_numbers<[2], [1], [1], [2], [0, 0, 0, 1, 1, 2], [0], [0]>} : vector<2x8x16xbf16>, vector<2x16x32xbf16>, vector<2x8x32xf32> -> vector<2x8x32xf32>
    "tpu.trace_stop"() : () -> ()
    %30 = arith.addf %27, %29 : vector<2x8x32xf32>
    %c0_21 = arith.constant 0 : index
    %c0_22 = arith.constant 0 : index
    %c0_23 = arith.constant 0 : index
    %31 = vector.load %arg9[%c0_21, %c0_22, %c0_23] : memref<2x8x32xf32, #tpu.memory_space<vmem>>, vector<2x8x32xf32>
    tpu.vector_store %arg9[%c0_21, %c0_22, %c0_23], %30 {strides = array<i32>} : memref<2x8x32xf32, #tpu.memory_space<vmem>>, vector<2x8x32xf32>,
    %c0_i32_24 = arith.constant 0 : i32
    %32 = arith.cmpi eq, %arg1, %c0_i32_24 : i32
    %33 = arith.extui %32 : i1 to i32
    %c0_i32_25 = arith.constant 0 : i32
    %34 = arith.cmpi ne, %33, %c0_i32_25 : i32
    scf.if %34 {
      %c0_26 = arith.constant 0 : index
      %c0_27 = arith.constant 0 : index
      %c0_28 = arith.constant 0 : index
      %35 = vector.load %arg9[%c0_26, %c0_27, %c0_28] : memref<2x8x32xf32, #tpu.memory_space<vmem>>, vector<2x8x32xf32>
      %36 = arith.addf %35, %3 : vector<2x8x32xf32>
      %37 = vector.shape_cast %36 : vector<2x8x32xf32> to vector<16x32xf32>
      %38 = arith.truncf %37 : vector<16x32xf32> to vector<16x32xbf16>
      %c0_29 = arith.constant 0 : index
      %c0_30 = arith.constant 0 : index
      %39 = vector.load %arg6[%c0_29, %c0_30] : memref<32x128xbf16, #tpu.memory_space<vmem>>, vector<32x128xbf16>
      %cst_31 = arith.constant dense<0.000000e+00> : vector<16x128xf32>
      %40 = tpu.matmul %38, %39, %cst_31 {dimension_numbers = #tpu.dot_dimension_numbers<[1], [0], [0], [1], [0, 0, 1, 1], [], []>} : vector<16x32xbf16>, vector<32x128xbf16>, vector<16x128xf32> -> vector<16x128xf32>
      %c0_32 = arith.constant 0 : index
      %c0_33 = arith.constant 0 : index
      %41 = vector.load %arg7[%c0_32, %c0_33] : memref<1x128xf32, #tpu.memory_space<vmem>>, vector<1x128xf32>
      %42 = vector.broadcast %41 : vector<1x128xf32> to vector<16x128xf32>
      %43 = arith.addf %40, %42 : vector<16x128xf32>
      %44 = vector.shape_cast %43 : vector<16x128xf32> to vector<2x8x128xf32>
      %c0_34 = arith.constant 0 : index
      %c0_35 = arith.constant 0 : index
      %c0_36 = arith.constant 0 : index
      %45 = vector.load %arg8[%c0_34, %c0_35, %c0_36] : memref<2x8x128xf32, #tpu.memory_space<vmem>>, vector<2x8x128xf32>
      tpu.vector_store %arg8[%c0_34, %c0_35, %c0_36], %44 {strides = array<i32>} : memref<2x8x128xf32, #tpu.memory_space<vmem>>, vector<2x8x128xf32>,
    } else {
    }
    return
  }
  func.func @transform_0(%arg0: i32, %arg1: i32) -> (i32, i32, i32) {
    %c0_i32 = arith.constant 0 : i32
    %c0_i32_0 = arith.constant 0 : i32
    %c0_i32_1 = arith.constant 0 : i32
    return %arg0, %c0_i32, %c0_i32_0 : i32, i32, i32
  }
  func.func @transform_1(%arg0: i32, %arg1: i32) -> (i32, i32, i32) {
    %c0_i32 = arith.constant 0 : i32
    %c0_i32_0 = arith.constant 0 : i32
    return %arg0, %arg1, %c0_i32 : i32, i32, i32
  }
  func.func @transform_2(%arg0: i32, %arg1: i32) -> (i32, i32, i32) {
    %c0_i32 = arith.constant 0 : i32
    %c0_i32_0 = arith.constant 0 : i32
    return %arg0, %arg1, %c0_i32 : i32, i32, i32
  }
  func.func @transform_3(%arg0: i32, %arg1: i32) -> (i32, i32, i32) {
    %c0_i32 = arith.constant 0 : i32
    %c0_i32_0 = arith.constant 0 : i32
    return %arg0, %c0_i32, %arg1 : i32, i32, i32
  }
  func.func @transform_4(%arg0: i32, %arg1: i32) -> (i32, i32) {
    %c0_i32 = arith.constant 0 : i32
    %c0_i32_0 = arith.constant 0 : i32
    %c0_i32_1 = arith.constant 0 : i32
    return %c0_i32, %c0_i32_0 : i32, i32
  }
  func.func @transform_5(%arg0: i32, %arg1: i32) -> (i32, i32) {
    %c0_i32 = arith.constant 0 : i32
    %c0_i32_0 = arith.constant 0 : i32
    %c0_i32_1 = arith.constant 0 : i32
    return %c0_i32, %c0_i32_0 : i32, i32
  }
  func.func @transform_6(%arg0: i32, %arg1: i32) -> (i32, i32, i32) {
    %c0_i32 = arith.constant 0 : i32
    %c0_i32_0 = arith.constant 0 : i32
    %c0_i32_1 = arith.constant 0 : i32
    return %arg0, %c0_i32, %c0_i32_0 : i32, i32, i32
  }
}

</mosaic_0001>

<bundles_post_ra>
// kernel: tpu_custom_call.1
= control target key start
LH: loop header
LB: loop body
LE: loop exit
PB: predicated region body
PF: predicated region fallthrough
CT: control target
= control target key end

     0   :  { %11 = vsyncpa [#allocation4], 0  ;;  %s781_s0 = inlined_call_operand.hbm [shape: f32[2,8,32], index: 0, kind: input, shape index: {}]   ;;  %s782_s1 = inlined_call_operand.hbm [shape: bf16[2,16,32], index: 1, kind: input, shape index: {}]   ;;  %s783_s2 = inlined_call_operand.hbm [shape: bf16[2,16,32], index: 2, kind: input, shape index: {}]   ;;  %s784_s3 = inlined_call_operand.vmem [shape: f32[2,1,16], index: 3, kind: input, shape index: {}]   ;;  %s785_s4 = inlined_call_operand.hbm [shape: bf16[32,128], index: 4, kind: input, shape index: {}]   ;;  %s786_s5 = inlined_call_operand.vmem [shape: f32[1,128], index: 5, kind: input, shape index: {}]   ;;  %s787_s6 = inlined_call_operand.hbm [shape: f32[2,8,128], index: 6, kind: output, shape index: {}]  }
   0x1   :  { %12 = vsyncpa [#allocation7], 0 }
   0x2   :  { %13 = vsyncpa [#allocation10], 0 }
   0x3   :  { %14 = vsyncpa [#allocation5], 0  ;;  %s652_s21 = smov [#allocation6]  }
   0x4   :  { %s32_s22 = sshll.u32 %s652_s21, 4  ;;  %s33_s22 = int_to_ptr.vmem [resolvable:$true] %s32_s22 }
   0x5   :  { %s552_s23 = scalar_lea.vmem %s33_s22, 256  ;;  %p557_p1 = scmp.lt.s32.totalorder %s33_s22, %s33_s22 }
   0x6   :  { %p553_p0 = scmp.ne.s32.totalorder %s33_s22, %s552_s23  ;;  %p558_p2 = scmp.lt.s32.totalorder %s552_s23, %s552_s23 }
   0x8   :  { %p559_p3 = por %p558_p2, %p557_p1 }
   0xa   :  { %p560_p4 = pnand %p559_p3, %p553_p0 }
   0xc   :  { %563 = shalt.err (!%p560_p4)
}
   0xd   :  { %s653_s24 = smov 64   ;;  %s654_s25 = smov 4  }
   0xe   :  { %38 = dma.hbm_to_vmem [thread:$0]  %s782_s1, 256, %s33_s22, [#allocation7], %s653_s24, %s653_s24, %s654_s25  }
   0xf   :  { %s655_s28 = smov [#allocation3]  }
  0x10   :  { %s20_s29 = sshll.u32 %s655_s28, 4  ;;  %s21_s29 = int_to_ptr.vmem [resolvable:$true] %s20_s29 }
  0x11   :  { %s572_s30 = scalar_lea.vmem %s21_s29, 256  ;;  %p577_p6 = scmp.lt.s32.totalorder %s21_s29, %s21_s29 }
  0x12   :  { %p573_p5 = scmp.ne.s32.totalorder %s21_s29, %s572_s30  ;;  %p578_p7 = scmp.lt.s32.totalorder %s572_s30, %s572_s30 }
  0x14   :  { %p579_p8 = por %p578_p7, %p577_p6 }
  0x16   :  { %p580_p9 = pnand %p579_p8, %p573_p5 }
  0x18   :  { %583 = shalt.err (!%p580_p9)
}
  0x19   :  { %s656_s7 = smov 128   ;;  %s657_s8 = smov 8  }
  0x1a   :  { %26 = dma.hbm_to_vmem [thread:$0]  %s781_s0, 256, %s21_s29, [#allocation4], %s656_s7, %s656_s7, %s657_s8  }
  0x1b   :  { %s658_s1 = smov [#allocation8]   ;;  %s659_s12 = smov [#allocation9]  }
  0x1c   :  { %s44_s11 = sshll.u32 %s658_s1, 4  ;;  %s58_s13 = sshll.u32 %s659_s12, 4  ;;  %s45_s11 = int_to_ptr.vmem [resolvable:$true] %s44_s11  ;;  %s59_s13 = int_to_ptr.vmem [resolvable:$true] %s58_s13 }
  0x1d   :  { %s592_s14 = scalar_lea.vmem %s45_s11, 256  ;;  %p597_p11 = scmp.lt.s32.totalorder %s45_s11, %s45_s11 }
  0x1e   :  { %p593_p10 = scmp.ne.s32.totalorder %s45_s11, %s592_s14  ;;  %p598_p12 = scmp.lt.s32.totalorder %s592_s14, %s592_s14 }
  0x20   :  { %p599_p13 = por %p598_p12, %p597_p11 }
  0x22   :  { %p600_p0 = pnand %p599_p13, %p593_p10 }
  0x24   :  { %603 = shalt.err (!%p600_p0)
}
  0x25   :  { %50 = dma.hbm_to_vmem [thread:$0]  %s783_s2, 256, %s45_s11, [#allocation7], %s653_s24, %s653_s24, %s654_s25  }
  0x26   :  { %s612_s0 = scalar_lea.vmem %s59_s13, 256  ;;  %p617_p2 = scmp.lt.s32.totalorder %s59_s13, %s59_s13 }
  0x27   :  { %p613_p1 = scmp.ne.s32.totalorder %s59_s13, %s612_s0  ;;  %p618_p3 = scmp.lt.s32.totalorder %s612_s0, %s612_s0 }
  0x29   :  { %p619_p4 = por %p618_p3, %p617_p2 }
  0x2b   :  { %p620_p5 = pnand %p619_p4, %p613_p1 }
  0x2d   :  { %623 = shalt.err (!%p620_p5)
}
  0x2e   :  { %64 = dma.hbm_to_vmem [thread:$0]  %s785_s4, 256, %s59_s13, [#allocation10], %s653_s24, %s653_s24, %s654_s25  }
  0x2f   :  { %644 = dma.done.wait [#allocation4], 256  }
  0x30   :  { %645 = vsyncadd [#allocation4], 4294967040 }
  0x31   :  { %646 = dma.done.wait [#allocation7], 512  }
  0x32   :  { %647 = vsyncadd [#allocation7], 4294966784 }
  0x33   :  { %648 = dma.done.wait [#allocation10], 256  }
  0x34   :  { %649 = vsyncadd [#allocation10], 4294967040  ;;  %vm84_vm0 = vcmask 261120   ;;  %v660_v0 = vmov 0.0   ;;  %vm661_vm1 = vmmov 0   ;;  %v530_v1 = vld [vmem:[#allocation6] sm:$0xff]   ;;  %v210_v11 = vlaneseq }
  0x35   :  { %486 = vmatprep.subr.bf16.mxu0 %v660_v0  ;;  %492 = vmatprep.subr.bf16.mxu1 %v660_v0  ;;  %85 = vst.msk [vmem:[#allocation2] sm:$0xff] %vm84_vm0, %v660_v0  ;;  %86 = vst.msk [vmem:[#allocation2 + $0x8] sm:$0xff] %vm84_vm0, %v660_v0  ;;  %v531_v2 = vld [vmem:[#allocation6 + $0x8] sm:$0xff]   ;;  %v111_v3 = vsel %vm84_vm0, %v530_v1, 0  ;;  %v734_v4 = vld [vmem:[#allocation3] sm:$0xff]  ;;  %v662_v16 = vmov 0  }
  0x36   :  { %488 = vmatprep.mubr.msk.bf16.mxu0 %vm661_vm1, %v660_v0  ;;  %494 = vmatprep.mubr.msk.bf16.mxu1 %vm661_vm1, %v660_v0  ;;  %v162_v5 = vsel %vm84_vm0, %v531_v2, 0  ;;  %v737_v6 = vld [vmem:[#allocation3 + $0x8] sm:$0xff]  ;;  %v89_v7 = vpack.c.bf16 %v734_v4, %v734_v4  ;;  %v532_v9 = vld [vmem:[#allocation8] sm:$0xff]   ;;  %v99_v12 = vld [vmem:[%s784_s3] sm:$0x1]  ;;  %v211_v13 = vshrl.u32 %v210_v11, 7 }
  0x37   :  { %487 = vmatpush3.bf16.xpose.msra.mxu0 %v111_v3  ;;  %493 = vmatpush3.bf16.xpose.msra.mxu1 %v162_v5  ;;  %v90_v8 = vpack.c.bf16 %v737_v6, %v737_v6  ;;  %v533_v10 = vld [vmem:[#allocation8 + $0x8] sm:$0xff]   ;;  %v100_v14 = vld [vmem:[%s784_s3 + $0x1] sm:$0x1]  ;;  %vm206_vm2 = vcmp.eq.f32.partialorder %v99_v12, 0.0  ;;  %vm222_vm5 = vcmask 130048   ;;  %v534_v12 = vld [vmem:[#allocation9 + $0x8] sm:$0xff]  }
  0x38   :  { %498 = vmatprep.subr.bf16.mxu0 %v660_v0  ;;  %504 = vmatprep.subr.bf16.mxu1 %v660_v0  ;;  %vm207_vm3 = vcmp.eq.f32.partialorder %v100_v14, 0.0  ;;  %v212_v15 = vsub.s32 0, %v211_v13  ;;  %v208_v17 = vsel %vm206_vm2, 1, %v662_v16  ;;  %v535_v13 = vld [vmem:[#allocation9] sm:$0xff]   ;;  %s663_s22 = smov [#allocation11]  }
  0x39   :  { %v209_v18 = vsel %vm207_vm3, 1, %v662_v16  ;;  %s449_s23 = sshll.u32 %s663_s22, 4  ;;  %s450_s23 = int_to_ptr.vmem [resolvable:$true] %s449_s23 }
  0x3a   :  { %v213_v19 = vrot.slane %v208_v17, %v212_v15  ;;  %v217_v20 = vrot.slane %v209_v18, %v212_v15  ;;  %s624_s24 = scalar_lea.vmem %s450_s23, 256  ;;  %p629_p7 = scmp.lt.s32.totalorder %s450_s23, %s450_s23 }
  0x3b   :  { %p625_p6 = scmp.ne.s32.totalorder %s450_s23, %s624_s24  ;;  %p630_p8 = scmp.lt.s32.totalorder %s624_s24, %s624_s24 }
  0x3c   :  { %vm218_vm4 = vcmp.eq.s32.totalorder %v213_v19, 1  ;;  %vm219_vm6 = vcmp.eq.s32.totalorder %v217_v20, 1  ;;  %v261_v14 = vld [vmem:[#allocation2] sm:$0xff]  ;;  %v262_v15 = vld [vmem:[#allocation2 + $0x8] sm:$0xff] }
  0x3d   :  { %p631_p9 = por %p630_p8, %p629_p7 }
  0x3e   :  { %489 = vmatmul.mubr.msk.bf16.vlgmr.msra.gmra.mxu0 %vm84_vm0, %v89_v7  ;;  %495 = vmatmul.mubr.msk.bf16.vlgmr.msra.gmra.mxu1 %vm84_vm0, %v90_v8 }
  0x3f   :  { %500 = vmatprep.mubr.msk.bf16.mxu0 %vm661_vm1, %v660_v0  ;;  %506 = vmatprep.mubr.msk.bf16.mxu1 %vm661_vm1, %v660_v0  ;;  %p632_p10 = pnand %p631_p9, %p625_p6 }
  0x40   :  { %499 = vmatpush3.bf16.msra.mxu0 %v532_v9  ;;  %505 = vmatpush3.bf16.msra.mxu1 %v533_v10 }
  0x41   :  { %510 = vmatprep.subr.bf16.mxu0 %v660_v0 }
  0xfe   :  { %v147_v21 = vpop.f32.mrf.mxu0  ;;  %v198_v23 = vpop.f32.mrf.mxu1 }
  0xff   :  { %v204_v22 = vmul.f32 0.17677669, %v147_v21  ;;  %v205_v24 = vmul.f32 0.17677669, %v198_v23 }
 0x100   :  { %v490_v25 = vpop.f32.mrf.mxu0  ;;  %v496_v27 = vpop.f32.mrf.mxu1 }
 0x101   :  { %v220_v26 = vsel %vm218_vm4, -1e+09, %v204_v22  ;;  %v221_v29 = vsel %vm219_vm6, -1e+09, %v205_v24 }
 0x102   :  { %v223_v28 = vsel %vm222_vm5, %v220_v26, -inf  ;;  %v150_v30 = vpop.f32.mrf.mxu0  ;;  %v230_v32 = vsel %vm222_vm5, %v221_v29, -inf  ;;  %v201_v33 = vpop.f32.mrf.mxu1 }
 0x103   :  { %v224_v31 = vrot.slane %v223_v28, 4  ;;  %v231_v34 = vrot.slane %v230_v32, 4  ;;  %v471_v30 = vld [vmem:[%s786_s5] ss:$0 sm:$0xff] }
 0x104   :  { %v491_v35 = vpop.f32.mrf.mxu0  ;;  %v497_v37 = vpop.f32.mrf.mxu1 }
 0x105   :  { %v225_v36 = vmax.f32 %v223_v28, %v224_v31  ;;  %v232_v38 = vmax.f32 %v230_v32, %v231_v34 }
 0x107   :  { %v226_v39 = vrot.slane %v225_v36, 2  ;;  %v233_v40 = vrot.slane %v232_v38, 2 }
 0x109   :  { %v227_v41 = vmax.f32 %v225_v36, %v226_v39  ;;  %v234_v42 = vmax.f32 %v232_v38, %v233_v40 }
 0x10b   :  { %v228_v43 = vrot.slane %v227_v41, 1  ;;  %v235_v44 = vrot.slane %v234_v42, 1 }
 0x10d   :  { %v229_v45 = vmax.f32 %v227_v41, %v228_v43  ;;  %v236_v46 = vmax.f32 %v234_v42, %v235_v44 }
 0x10f   :  { %v237_v47 = vsub.f32 %v220_v26, %v229_v45  ;;  %v238_v48 = vsub.f32 %v221_v29, %v236_v46 }
 0x111   :  { %v239_v49 = vmul.f32 1.442695, %v237_v47  ;;  %v241_v50 = vmul.f32 1.442695, %v238_v48 }
 0x113   :  { %536 = vpow2.f32 %v239_v49 }
 0x114   :  { %538 = vpow2.f32 %v241_v50 }
 0x120   :  { %v537_v51 = vpop.eup %536 }
 0x121   :  { %v539_v52 = vpop.eup %538  ;;  %v243_v53 = vsel %vm222_vm5, %v537_v51, 0.0 }
 0x122   :  { %v244_v54 = vrot.slane %v243_v53, 4  ;;  %v250_v55 = vsel %vm222_vm5, %v539_v52, 0.0 }
 0x123   :  { %v251_v56 = vrot.slane %v250_v55, 4 }
 0x124   :  { %v245_v57 = vadd.f32 %v244_v54, %v243_v53 }
 0x125   :  { %v252_v58 = vadd.f32 %v251_v56, %v250_v55 }
 0x126   :  { %v246_v59 = vrot.slane %v245_v57, 2 }
 0x127   :  { %v253_v60 = vrot.slane %v252_v58, 2 }
 0x128   :  { %v247_v61 = vadd.f32 %v246_v59, %v245_v57 }
 0x129   :  { %v254_v62 = vadd.f32 %v253_v60, %v252_v58 }
 0x12a   :  { %v248_v63 = vrot.slane %v247_v61, 1 }
 0x12b   :  { %v255_v1 = vrot.slane %v254_v62, 1 }
 0x12c   :  { %v249_v2 = vadd.f32 %v248_v63, %v247_v61 }
 0x12d   :  { %v256_v3 = vadd.f32 %v255_v1, %v254_v62 }
 0x12e   :  { %540 = vrcp.f32 %v249_v2 }
 0x12f   :  { %542 = vrcp.f32 %v256_v3 }
 0x13b   :  { %v541_v5 = vpop.eup %540 }
 0x13c   :  { %v543_v7 = vpop.eup %542  ;;  %v259_v8 = vmul.f32 %v541_v5, %v537_v51 }
 0x13d   :  { %v260_v9 = vmul.f32 %v543_v7, %v539_v52 }
 0x13e   :  { %v263_v10 = vpack.c.bf16 %v259_v8, %v259_v8 }
 0x13f   :  { %v264_v11 = vpack.c.bf16 %v260_v9, %v260_v9 }
 0x140   :  { %501 = vmatmul.mubr.msk.bf16.vlgmr.msra.gmra.mxu0 %vm222_vm5, %v263_v10 }
 0x141   :  { %507 = vmatmul.mubr.msk.bf16.vlgmr.msra.gmra.mxu1 %vm222_vm5, %v264_v11  ;;  %514 = vmatprep.mubr.msk.bf16.mxu0 %vm661_vm1, %v660_v0 }
 0x142   :  { %511 = vmatpush3.bf16.msra.mxu0 %v534_v12 }
 0x143   :  { %512 = vmatprep.subr.bf16.mxu0 %v660_v0 }
 0x146   :  { %513 = vmatpush3.bf16.msra.mxu0 %v535_v13 }
 0x200   :  { %v308_v16 = vpop.f32.mrf.mxu0 }
 0x201   :  { %v363_v17 = vadd.f32 %v308_v16, %v261_v14  ;;  %v357_v18 = vpop.f32.mrf.mxu1 }
 0x202   :  { %v364_v19 = vadd.f32 %v357_v18, %v262_v15  ;;  %v502_v20 = vpop.f32.mrf.mxu0 }
 0x203   :  { %365 = vst.msk [vmem:[#allocation2] sm:$0xff] %vm84_vm0, %v363_v17  ;;  %v508_v21 = vpop.f32.mrf.mxu1 }
 0x204   :  { %366 = vst.msk [vmem:[#allocation2 + $0x8] sm:$0xff] %vm84_vm0, %v364_v19  ;;  %v311_v22 = vpop.f32.mrf.mxu0 }
 0x205   :  { %v360_v23 = vpop.f32.mrf.mxu1 }
 0x206   :  { %v503_v24 = vpop.f32.mrf.mxu0 }
 0x207   :  { %v509_v25 = vpop.f32.mrf.mxu1 }
 0x20a   :  { %v370_v26 = vld [vmem:[#allocation2] sm:$0xff] }
 0x20b   :  { %v371_v27 = vld [vmem:[#allocation2 + $0x8] sm:$0xff]  ;;  %v372_v0 = vadd.f32 %v370_v26, %v734_v4 }
 0x20c   :  { %v373_v28 = vadd.f32 %v371_v27, %v737_v6 }
 0x20e   :  { %v374_v29 = vpack.c.bf16 %v373_v28, %v372_v0 }
 0x210   :  { %515 = vmatmul.mubr.msk.bf16.vlgmr.msra.gmra.mxu0 %vm84_vm0, %v374_v29 }
 0x2d0   :  { %v435_v31 = vpop.f32.mrf.mxu0 }
 0x2d1   :  { %v436_v32 = vadd.f32 %v471_v30, %v435_v31 }
 0x2d2   :  { %v516_v33 = vpop.f32.mrf.mxu0 }
 0x2d3   :  { %442 = vst [vmem:[#allocation11] sm:$0xff] %v436_v32 }
 0x2d4   :  { %v438_v34 = vpop.f32.mrf.mxu0 }
 0x2d5   :  { %v439_v35 = vadd.f32 %v471_v30, %v438_v34 }
 0x2d6   :  { %v517_v36 = vpop.f32.mrf.mxu0 }
 0x2d7   :  { %443 = vst [vmem:[#allocation11 + $0x8] sm:$0xff] %v439_v35 }
 0x2d8   :  { %635 = shalt.err (!%p632_p10)
}
 0x2d9   :  { %455 = dma.vmem_to_hbm [thread:$0]  %s450_s23, 256, %s787_s6, [#allocation5], %s656_s7, %s656_s7, %s657_s8  }
 0x2da   :  { %650 = dma.done.wait [#allocation5], 256  }
 0x2db   :  { %651 = vsyncadd [#allocation5], 4294967040 }
 0x2dc   :  { %459 = vsyncpa [#allocation4], 1 }
 0x2dd   :  { %460 = vsyncpa [#allocation7], 1 }
 0x2de   :  { %461 = vsyncpa [#allocation10], 1 }
 0x2df   :  { %462 = vsyncpa [#allocation5], 1 }

</bundles_post_ra>
